<compile_context>
chip_gen: v5e
topology: v5e:2x2
jax: 0.10.0
libtpu: 0.0.40
codegen_flags: <defaults>
</compile_context>

<pallas_src>
import jax
import jax.numpy as jnp
from jax.experimental import pallas as pl
from jax.experimental.pallas import tpu as pltpu

EPS = 1e-12  # F.normalize default eps
LANE = 128


def _round_up(a, m):
    return ((a + m - 1) // m) * m


def _l2_normalize(x):
    # x * rsqrt(max(||x||^2, eps^2)) ~= x / max(||x||, eps)  (differs only for 0 < ||x|| < eps).
    ss = jnp.sum(x * x, axis=-1, keepdims=True)
    return x * jax.lax.rsqrt(jnp.maximum(ss, EPS * EPS))


def _mlp_kernel(x_ref, w1n_ref, w2n_ref, w3n_ref, o_ref):
    # x_ref:   (K, TB)    batch on lanes
    # w1n_ref: (H1, K)    row-normalized W1 (PyTorch (out, in) layout)
    # w2n_ref: (H2, H1)   row-normalized W2
    # w3n_ref: (H2, 1)    row-normalized W3, as a column for the VPU reduce
    # o_ref:   (1, TB)    lane-dense output row
    x = x_ref[...].astype(jnp.float32)
    k_dim = x.shape[0]

    # ---- layer 1: W1n @ normalize(x), rank-K VPU update (K is tiny) ----
    if k_dim <= 8:
        ss = x[0:1, :] * x[0:1, :]
        for k in range(1, k_dim):
            ss = ss + x[k:k + 1, :] * x[k:k + 1, :]
    else:
        ss = jnp.sum(x * x, axis=0, keepdims=True)
    xn = x * jax.lax.rsqrt(jnp.maximum(ss, EPS * EPS))            # (K, TB)

    w1n = w1n_ref[...].astype(jnp.float32)                        # (H1, K)
    if k_dim <= 8:
        h = w1n[:, 0:1] * xn[0:1, :]
        for k in range(1, k_dim):
            h = h + w1n[:, k:k + 1] * xn[k:k + 1, :]
    else:
        h = jnp.dot(w1n, xn, preferred_element_type=jnp.float32)
    h = jnp.maximum(h, 0.0)                                       # (H1, TB)

    # ---- layer 2: (W2n @ normalize(h)) == (W2n @ h) * rsqrt(||h||^2)  (MXU matmul) ----
    s1 = jax.lax.rsqrt(jnp.maximum(jnp.sum(h * h, axis=0, keepdims=True), EPS * EPS))   # (1, TB)
    h2 = jnp.dot(w2n_ref[...].astype(jnp.float32), h, preferred_element_type=jnp.float32)
    h2 = jnp.maximum(h2 * s1, 0.0)                                # (H2, TB)

    # ---- layer 3: (w3n . normalize(h2)) as VPU multiply + sublane reduce -> (1, TB) ----
    s2 = jax.lax.rsqrt(jnp.maximum(jnp.sum(h2 * h2, axis=0, keepdims=True), EPS * EPS))  # (1, TB)
    w3c = w3n_ref[...].astype(jnp.float32)                        # (H2, 1)
    out = jnp.sum(h2 * w3c, axis=0, keepdims=True) * s2           # (1, TB)
    o_ref[...] = out.astype(o_ref.dtype)


def neural_network_forward(x, w1, w2, w3, *, max_tb=8192):
    """Pallas TPU forward for NeuralNetwork.

    x:  (B, num_input_feat) float32
    w1: (64, num_input_feat), w2: (32, 64), w3: (1, 32)  -- PyTorch (out, in) layout.
    Returns (B, 1) float32 (matches the PyTorch module output).
    """
    B, K = x.shape
    H1 = w1.shape[0]   # 64
    H2 = w2.shape[0]   # 32
    H3 = w3.shape[0]   # 1

    # Constant-per-call weight prep hoisted out of the kernel.
    w1n = _l2_normalize(w1)        # (H1, K)
    w2n = _l2_normalize(w2)        # (H2, H1)
    w3n = _l2_normalize(w3).T      # (H2, H3) column for the in-kernel VPU reduce

    # Lane-axis (batch) tiling: multiples of 128, cap at max_tb; keep >= 2 grid steps
    # when there is enough work so v7x's two TensorCores both get a share.
    B_lane = _round_up(max(B, 1), LANE)
    TB = min(max_tb, B_lane)
    if TB == B_lane and B_lane >= 2 * LANE:
        TB = _round_up(B_lane // 2, LANE)
    B_pad = _round_up(B_lane, TB)

    # Batch-on-lanes layout: (K, B_pad). Padding lanes are zero, normalize to zero, and are sliced off.
    x_t = jnp.zeros((K, B_pad), x.dtype).at[:, :B].set(x.T)

    grid = (B_pad // TB,)
    out_t = pl.pallas_call(
        _mlp_kernel,
        out_shape=jax.ShapeDtypeStruct((H3, B_pad), jnp.float32),
        grid_spec=pltpu.PrefetchScalarGridSpec(
            num_scalar_prefetch=0,
            grid=grid,
            in_specs=[
                pl.BlockSpec((K, TB), lambda i: (0, i)),      # batch-tiled activations (lanes)
                pl.BlockSpec((H1, K), lambda i: (0, 0)),      # weights resident in VMEM
                pl.BlockSpec((H2, H1), lambda i: (0, 0)),
                pl.BlockSpec((H2, H3), lambda i: (0, 0)),
            ],
            out_specs=pl.BlockSpec((H3, TB), lambda i: (0, i)),  # lane-dense (1, TB) output row
        ),
        compiler_params=pltpu.CompilerParams(
            dimension_semantics=("parallel",),        # shard batch tiles across TCs on v7x
            vmem_limit_bytes=32 * 1024 * 1024,        # safe on v5e/v6e/v7x, ample for TB=8192
        ),
    )(x_t, w1n, w2n, w3n)

    return out_t[:, :B].T  # (B, 1)


def _xavier_uniform(key, out_features, in_features):
    # Matches nn.init.xavier_uniform_ bounds: U(-a, a), a = sqrt(6 / (fan_in + fan_out)).
    a = jnp.sqrt(6.0 / (in_features + out_features))
    return jax.random.uniform(
        key, (out_features, in_features), dtype=jnp.float32, minval=-a, maxval=a
    )


if __name__ == "__main__":
    key = jax.random.PRNGKey(0)
    k_x, k_w1, k_w2, k_w3 = jax.random.split(key, 4)

    num_input_feat = 2
    batch = 8

    x = jax.random.normal(k_x, (batch, num_input_feat), dtype=jnp.float32)
    w1 = _xavier_uniform(k_w1, 64, num_input_feat)
    w2 = _xavier_uniform(k_w2, 32, 64)
    w3 = _xavier_uniform(k_w3, 1, 32)

    fwd = jax.jit(neural_network_forward)  # lets XLA fuse the tiny transpose/pad/slice around the kernel
    out = fwd(x, w1, w2, w3)
    jax.block_until_ready(out)

    # Pure-JAX reference with the original PyTorch semantics (x / max(||x||, eps), W.T matmuls).
    def ref_normalize(v):
        n = jnp.sqrt(jnp.sum(v * v, axis=-1, keepdims=True))
        return v / jnp.maximum(n, EPS)

    def ref(x, w1, w2, w3):
        def nl(h, w):
            return ref_normalize(h) @ ref_normalize(w).T
        h = jnp.maximum(nl(x, w1), 0.0)
        h = jnp.maximum(nl(h, w2), 0.0)
        return nl(h, w3)

    expected = ref(x, w1, w2, w3)
    assert out.shape == (batch, 1)
    assert jnp.allclose(out, expected, atol=1e-5, rtol=1e-5)

    print("KERNEL_OK")
</pallas_src>

<mosaic_0001>
module attributes {stable_mosaic.version = 11 : i64} {
  func.func @_mlp_kernel(%arg0: i32, %arg1: memref<2x128xf32, #tpu.memory_space<vmem>>, %arg2: memref<64x2xf32, #tpu.memory_space<vmem>>, %arg3: memref<32x64xf32, #tpu.memory_space<vmem>>, %arg4: memref<32x1xf32, #tpu.memory_space<vmem>>, %arg5: memref<1x128xf32, #tpu.memory_space<vmem>>) attributes {dimension_semantics = [#tpu.dimension_semantics<parallel>], iteration_bounds = array<i64: 1>, scalar_prefetch = 0 : i64, scratch_operands = 0 : i64, tpu.core_type = #tpu.core_type<tc>, window_params = [{transform_indices = @transform_0, window_bounds = array<i64: 2, 128>}, {pipeline_mode = #tpu.pipeline_mode<synchronous>, transform_indices = @transform_1, window_bounds = array<i64: 64, 2>}, {pipeline_mode = #tpu.pipeline_mode<synchronous>, transform_indices = @transform_2, window_bounds = array<i64: 32, 64>}, {pipeline_mode = #tpu.pipeline_mode<synchronous>, transform_indices = @transform_3, window_bounds = array<i64: 32, 1>}, {transform_indices = @transform_4, window_bounds = array<i64: 1, 128>}]} {
    %c0 = arith.constant 0 : index
    %c0_0 = arith.constant 0 : index
    %0 = vector.load %arg1[%c0, %c0_0] : memref<2x128xf32, #tpu.memory_space<vmem>>, vector<2x128xf32>
    %1 = vector.extract_strided_slice %0 {offsets = [0, 0], sizes = [1, 128], strides = [1, 1]} : vector<2x128xf32> to vector<1x128xf32>
    %2 = vector.extract_strided_slice %0 {offsets = [0, 0], sizes = [1, 128], strides = [1, 1]} : vector<2x128xf32> to vector<1x128xf32>
    %3 = arith.mulf %1, %2 : vector<1x128xf32>
    %4 = vector.extract_strided_slice %0 {offsets = [1, 0], sizes = [1, 128], strides = [1, 1]} : vector<2x128xf32> to vector<1x128xf32>
    %5 = vector.extract_strided_slice %0 {offsets = [1, 0], sizes = [1, 128], strides = [1, 1]} : vector<2x128xf32> to vector<1x128xf32>
    %6 = arith.mulf %4, %5 : vector<1x128xf32>
    %7 = arith.addf %3, %6 : vector<1x128xf32>
    %cst = arith.constant 1.000000e-24 : f32
    %8 = vector.broadcast %cst : f32 to vector<1x128xf32>
    %9 = arith.maximumf %7, %8 : vector<1x128xf32>
    %10 = math.rsqrt %9 : vector<1x128xf32>
    %11 = vector.broadcast %10 : vector<1x128xf32> to vector<2x128xf32>
    %12 = arith.mulf %0, %11 : vector<2x128xf32>
    %c0_1 = arith.constant 0 : index
    %c0_2 = arith.constant 0 : index
    %13 = vector.load %arg2[%c0_1, %c0_2] : memref<64x2xf32, #tpu.memory_space<vmem>>, vector<64x2xf32>
    %14 = vector.extract_strided_slice %13 {offsets = [0, 0], sizes = [64, 1], strides = [1, 1]} : vector<64x2xf32> to vector<64x1xf32>
    %15 = vector.extract_strided_slice %12 {offsets = [0, 0], sizes = [1, 128], strides = [1, 1]} : vector<2x128xf32> to vector<1x128xf32>
    %16 = vector.broadcast %14 : vector<64x1xf32> to vector<64x128xf32>
    %17 = vector.broadcast %15 : vector<1x128xf32> to vector<64x128xf32>
    %18 = arith.mulf %16, %17 : vector<64x128xf32>
    %19 = vector.extract_strided_slice %13 {offsets = [0, 1], sizes = [64, 1], strides = [1, 1]} : vector<64x2xf32> to vector<64x1xf32>
    %20 = vector.extract_strided_slice %12 {offsets = [1, 0], sizes = [1, 128], strides = [1, 1]} : vector<2x128xf32> to vector<1x128xf32>
    %21 = vector.broadcast %19 : vector<64x1xf32> to vector<64x128xf32>
    %22 = vector.broadcast %20 : vector<1x128xf32> to vector<64x128xf32>
    %23 = arith.mulf %21, %22 : vector<64x128xf32>
    %24 = arith.addf %18, %23 : vector<64x128xf32>
    %cst_3 = arith.constant 0.000000e+00 : f32
    %25 = vector.broadcast %cst_3 : f32 to vector<64x128xf32>
    %26 = arith.maximumf %24, %25 : vector<64x128xf32>
    %27 = arith.mulf %26, %26 : vector<64x128xf32>
    %cst_4 = arith.constant dense<0.000000e+00> : vector<128xf32>
    %28 = vector.multi_reduction <add>, %27, %cst_4 [0] : vector<64x128xf32> to vector<128xf32>
    %29 = vector.shape_cast %28 : vector<128xf32> to vector<1x128xf32>
    %cst_5 = arith.constant 1.000000e-24 : f32
    %30 = vector.broadcast %cst_5 : f32 to vector<1x128xf32>
    %31 = arith.maximumf %29, %30 : vector<1x128xf32>
    %32 = math.rsqrt %31 : vector<1x128xf32>
    %c0_6 = arith.constant 0 : index
    %c0_7 = arith.constant 0 : index
    %33 = vector.load %arg3[%c0_6, %c0_7] : memref<32x64xf32, #tpu.memory_space<vmem>>, vector<32x64xf32>
    %cst_8 = arith.constant dense<0.000000e+00> : vector<32x128xf32>
    %34 = tpu.matmul %33, %26, %cst_8 {dimension_numbers = #tpu.dot_dimension_numbers<[1], [0], [0], [1], [0, 0, 1, 1], [], []>} : vector<32x64xf32>, vector<64x128xf32>, vector<32x128xf32> -> vector<32x128xf32>
    %35 = vector.broadcast %32 : vector<1x128xf32> to vector<32x128xf32>
    %36 = arith.mulf %34, %35 : vector<32x128xf32>
    %cst_9 = arith.constant 0.000000e+00 : f32
    %37 = vector.broadcast %cst_9 : f32 to vector<32x128xf32>
    %38 = arith.maximumf %36, %37 : vector<32x128xf32>
    %39 = arith.mulf %38, %38 : vector<32x128xf32>
    %cst_10 = arith.constant dense<0.000000e+00> : vector<128xf32>
    %40 = vector.multi_reduction <add>, %39, %cst_10 [0] : vector<32x128xf32> to vector<128xf32>
    %41 = vector.shape_cast %40 : vector<128xf32> to vector<1x128xf32>
    %cst_11 = arith.constant 1.000000e-24 : f32
    %42 = vector.broadcast %cst_11 : f32 to vector<1x128xf32>
    %43 = arith.maximumf %41, %42 : vector<1x128xf32>
    %44 = math.rsqrt %43 : vector<1x128xf32>
    %c0_12 = arith.constant 0 : index
    %c0_13 = arith.constant 0 : index
    %45 = vector.load %arg4[%c0_12, %c0_13] : memref<32x1xf32, #tpu.memory_space<vmem>>, vector<32x1xf32>
    %46 = vector.broadcast %45 : vector<32x1xf32> to vector<32x128xf32>
    %47 = arith.mulf %38, %46 : vector<32x128xf32>
    %cst_14 = arith.constant dense<0.000000e+00> : vector<128xf32>
    %48 = vector.multi_reduction <add>, %47, %cst_14 [0] : vector<32x128xf32> to vector<128xf32>
    %49 = vector.shape_cast %48 : vector<128xf32> to vector<1x128xf32>
    %50 = arith.mulf %49, %44 : vector<1x128xf32>
    %c0_15 = arith.constant 0 : index
    %c0_16 = arith.constant 0 : index
    %51 = vector.load %arg5[%c0_15, %c0_16] : memref<1x128xf32, #tpu.memory_space<vmem>>, vector<1x128xf32>
    tpu.vector_store %arg5[%c0_15, %c0_16], %50 {strides = array<i32>} : memref<1x128xf32, #tpu.memory_space<vmem>>, vector<1x128xf32>,
    return
  }
  func.func @transform_0(%arg0: i32) -> (i32, i32) {
    %c0_i32 = arith.constant 0 : i32
    %c0_i32_0 = arith.constant 0 : i32
    return %c0_i32, %arg0 : i32, i32
  }
  func.func @transform_1(%arg0: i32) -> (i32, i32) {
    %c0_i32 = arith.constant 0 : i32
    %c0_i32_0 = arith.constant 0 : i32
    %c0_i32_1 = arith.constant 0 : i32
    return %c0_i32, %c0_i32_0 : i32, i32
  }
  func.func @transform_2(%arg0: i32) -> (i32, i32) {
    %c0_i32 = arith.constant 0 : i32
    %c0_i32_0 = arith.constant 0 : i32
    %c0_i32_1 = arith.constant 0 : i32
    return %c0_i32, %c0_i32_0 : i32, i32
  }
  func.func @transform_3(%arg0: i32) -> (i32, i32) {
    %c0_i32 = arith.constant 0 : i32
    %c0_i32_0 = arith.constant 0 : i32
    %c0_i32_1 = arith.constant 0 : i32
    return %c0_i32, %c0_i32_0 : i32, i32
  }
  func.func @transform_4(%arg0: i32) -> (i32, i32) {
    %c0_i32 = arith.constant 0 : i32
    %c0_i32_0 = arith.constant 0 : i32
    return %c0_i32, %arg0 : i32, i32
  }
}

</mosaic_0001>

<bundles_post_ra>
// kernel: neural_network_forward.1
= control target key start
LH: loop header
LB: loop body
LE: loop exit
PB: predicated region body
PF: predicated region fallthrough
CT: control target
= control target key end

     0   :  { %v353_v0 = vmov 1   ;;  %v354_v1 = vmov 0   ;;  %vm186_vm3 = vcmask 523264   ;;  %s486_s1 = inlined_call_operand.vmem [shape: f32[64,2], index: 1, kind: input, shape index: {}]   ;;  %s487_s3 = inlined_call_operand.vmem [shape: f32[32,1], index: 3, kind: input, shape index: {}]   ;;  %s488_s0 = inlined_call_operand.vmem [shape: f32[2,128], index: 0, kind: input, shape index: {}]   ;;  %s489_s2 = inlined_call_operand.vmem [shape: f32[32,64], index: 2, kind: input, shape index: {}]   ;;  %s490_s4 = inlined_call_operand.vmem [shape: f32[1,128], index: 4, kind: output, shape index: {}]  }
   0x1   :  { %333 = vset.pattern.permute.xlu0 %v353_v0  ;;  %335 = vset.pattern.permute.xlu1 %v354_v1  ;;  %v43_v2 = vld [vmem:[%s486_s1 + $0x38] sm:$0xff]  ;;  %v42_v3 = vld [vmem:[%s486_s1 + $0x30] sm:$0xff]  ;;  %v41_v4 = vld [vmem:[%s486_s1 + $0x28] sm:$0xff] }
   0x2   :  { %122 = vperm.xlu0 %333, %v43_v2   ;;  %76 = vperm.xlu1 %335, %v42_v3   ;;  %v39_v5 = vld [vmem:[%s486_s1 + $0x18] sm:$0xff]  ;;  %v40_v6 = vld [vmem:[%s486_s1 + $0x20] sm:$0xff]  ;;  %v37_v7 = vld [vmem:[%s486_s1 + $0x8] sm:$0xff] }
   0x3   :  { %337 = vset.pattern.permute.xlu2 %v354_v1  ;;  %v38_v8 = vld [vmem:[%s486_s1 + $0x10] sm:$0xff]  ;;  %v36_v9 = vld [vmem:[%s486_s1] sm:$0xff]  ;;  %v263_v11 = vld [vmem:[%s487_s3 + $0x18] sm:$0xff] }
   0x4   :  { %71 = vperm.xlu2 %337, %v41_v4   ;;  %v260_v10 = vld [vmem:[%s487_s3] sm:$0xff]  ;;  %v262_v57 = vld [vmem:[%s487_s3 + $0x10] sm:$0xff]  ;;  %v261_v58 = vld [vmem:[%s487_s3 + $0x8] sm:$0xff] }
   0x5   :  { %v17_v12 = vld [vmem:[%s488_s0] sm:$0x3] }
   0x6   :  { %v18_v13 = vmul.f32 %v17_v12, %v17_v12 }
   0x8   :  { %v20_v14 = vrot.slane %v18_v13, 1 }
   0xa   :  { %334 = vset.pattern.permute.xlu0 %v354_v1  ;;  %336 = vset.pattern.permute.xlu1 %v353_v0  ;;  %v22_v15 = vadd.f32 %v20_v14, %v18_v13  ;;  %v182_v14 = vld [vmem:[%s489_s2] sm:$0xff] }
   0xb   :  { %81 = vperm.xlu0 %334, %v43_v2   ;;  %118 = vperm.xlu1 %336, %v42_v3  }
   0xc   :  { %338 = vset.pattern.permute.xlu2 %v353_v0  ;;  %v23_v16 = vmax.f32 %v22_v15, 1e-24  ;;  %v183_v15 = vld [vmem:[%s489_s2 + $0x8] sm:$0xff] }
   0xd   :  { %114 = vperm.xlu2 %338, %v41_v4  }
   0xe   :  { %347 = vrsqrt.f32 %v23_v16  ;;  %vm30_vm0 = vweird.f32 %v23_v16 }
  0x13   :  { %339 = vset.pattern.permute.xlu1 %v354_v1  ;;  %61 = vperm.xlu0 %334, %v39_v5  }
  0x14   :  { %66 = vperm.xlu1 %339, %v40_v6   ;;  %v348_v17 = vpop.eup %347 }
  0x15   :  { %110 = vperm.xlu2 %338, %v40_v6   ;;  %v25_v18 = vmul.f32 %v348_v17, %v23_v16  ;;  %vm31_vm1 = vweird.f32 %v348_v17 }
  0x16   :  { %vm32_vm2 = vmor %vm30_vm0, %vm31_vm1 }
  0x17   :  { %v26_v19 = vmul.f32 %v348_v17, %v25_v18  ;;  %v184_v18 = vld [vmem:[%s489_s2 + $0x10] sm:$0xff] }
  0x19   :  { %v27_v20 = vmul.f32 0.5, %v26_v19  ;;  %v185_v19 = vld [vmem:[%s489_s2 + $0x18] sm:$0xff] }
  0x1b   :  { %342 = vset.pattern.permute.xlu0 %v353_v0  ;;  %v28_v21 = vsub.f32 1.5, %v27_v20 }
  0x1c   :  { %340 = vset.pattern.permute.xlu1 %v353_v0  ;;  %98 = vperm.xlu0 %342, %v37_v7  }
  0x1d   :  { %106 = vperm.xlu1 %340, %v39_v5   ;;  %341 = vset.pattern.permute.xlu2 %v354_v1  ;;  %v29_v22 = vmul.f32 %v348_v17, %v28_v21 }
  0x1e   :  { %56 = vperm.xlu2 %341, %v38_v8  }
  0x1f   :  { %v33_v24 = vsel %vm32_vm2, %v348_v17, %v29_v22 }
  0x20   :  { %v34_v25 = vperm.slane %v33_v24, 0 }
  0x22   :  { %v35_v28 = vmul.f32 %v34_v25, %v17_v12 }
  0x24   :  { %346 = vset.pattern.permute.xlu0 %v354_v1  ;;  %v413_v30 = vperm.slane %v35_v28, 0  ;;  %v415_v31 = vperm.slane %v35_v28, 1 }
  0x25   :  { %102 = vperm.xlu1 %340, %v38_v8   ;;  %276 = vperm.xlu0 %346, %v262_v57  }
  0x26   :  { %51 = vperm.xlu2 %341, %v37_v7  }
  0x2d   :  { %343 = vset.pattern.permute.xlu1 %v354_v1 }
  0x2e   :  { %46 = vperm.xlu1 %343, %v36_v9   ;;  %344 = vset.pattern.permute.xlu2 %v353_v0 }
  0x2f   :  { %94 = vperm.xlu2 %344, %v36_v9  }
  0x36   :  { %266 = vperm.xlu1 %343, %v260_v10  }
  0x37   :  { %345 = vset.pattern.permute.xlu2 %v354_v1 }
  0x38   :  { %271 = vperm.xlu2 %345, %v261_v58  }
  0x3e   :  { %281 = vperm.xlu1 %343, %v263_v11  }
  0x5e   :  { %v72_v23 = vpop.permute.xlu2 %71 }
  0x5f   :  { %v90_v33 = vmul.f32 %v413_v30, %v72_v23 }
  0x67   :  { %v115_v29 = vpop.permute.xlu2 %114 }
  0x68   :  { %v131_v37 = vmul.f32 %v415_v31, %v115_v29 }
  0x6a   :  { %v139_v43 = vadd.f32 %v131_v37, %v90_v33 }
  0x6c   :  { %v431_v46 = vmax.f32 %v139_v43, 0.0 }
  0x6f   :  { %v111_v40 = vpop.permute.xlu2 %110 }
  0x70   :  { %v130_v48 = vmul.f32 %v415_v31, %v111_v40 }
  0x74   :  { %v77_v26 = vpop.permute.xlu1 %76  ;;  %v123_v27 = vpop.permute.xlu0 %122 }
  0x75   :  { %v133_v32 = vmul.f32 %v415_v31, %v123_v27  ;;  %v91_v36 = vmul.f32 %v413_v30, %v77_v26  ;;  %v155_v26 = vmul.f32 %v431_v46, %v431_v46 }
  0x78   :  { %v57_v52 = vpop.permute.xlu2 %56 }
  0x79   :  { %v87_v2 = vmul.f32 %v413_v30, %v57_v52 }
  0x7d   :  { %v82_v34 = vpop.permute.xlu0 %81  ;;  %v119_v35 = vpop.permute.xlu1 %118 }
  0x7e   :  { %v92_v38 = vmul.f32 %v413_v30, %v82_v34  ;;  %v132_v39 = vmul.f32 %v415_v31, %v119_v35 }
  0x80   :  { %v141_v41 = vadd.f32 %v133_v32, %v92_v38  ;;  %v140_v42 = vadd.f32 %v132_v39, %v91_v36  ;;  %v52_v61 = vpop.permute.xlu2 %51 }
  0x81   :  { %v86_v0 = vmul.f32 %v413_v30, %v52_v61 }
  0x82   :  { %v423_v44 = vmax.f32 %v141_v41, 0.0  ;;  %v425_v45 = vmax.f32 %v140_v42, 0.0 }
  0x84   :  { %207 = vmatpush.msra.mxu0 %v423_v44  ;;  %307 = vmatpush.msra.mxu1 %v423_v44  ;;  %v156_v28 = vmul.f32 %v425_v45, %v425_v45 }
  0x85   :  { %308 = vmatpush.msra.mxu2 %v423_v44  ;;  %309 = vmatpush.msra.mxu3 %v423_v44  ;;  %v62_v51 = vpop.permute.xlu0 %61 }
  0x86   :  { %v67_v47 = vpop.permute.xlu1 %66  ;;  %208 = vmatpush.msra.mxu0 %v425_v45  ;;  %310 = vmatpush.msra.mxu1 %v425_v45  ;;  %v88_v55 = vmul.f32 %v413_v30, %v62_v51 }
  0x87   :  { %v89_v49 = vmul.f32 %v413_v30, %v67_v47  ;;  %311 = vmatpush.msra.mxu2 %v425_v45  ;;  %312 = vmatpush.msra.mxu3 %v425_v45 }
  0x88   :  { %209 = vmatpush.msra.mxu0 %v431_v46  ;;  %313 = vmatpush.msra.mxu1 %v431_v46 }
  0x89   :  { %v138_v50 = vadd.f32 %v130_v48, %v89_v49  ;;  %314 = vmatpush.msra.mxu2 %v431_v46  ;;  %315 = vmatpush.msra.mxu3 %v431_v46  ;;  %v95_v7 = vpop.permute.xlu2 %94 }
  0x8a   :  { %v126_v9 = vmul.f32 %v415_v31, %v95_v7 }
  0x8b   :  { %v443_v53 = vmax.f32 %v138_v50, 0.0 }
  0x8d   :  { %210 = vmatpush.msra.mxu0 %v443_v53  ;;  %316 = vmatpush.msra.mxu1 %v443_v53  ;;  %v154_v24 = vmul.f32 %v443_v53, %v443_v53 }
  0x8e   :  { %317 = vmatpush.msra.mxu2 %v443_v53  ;;  %318 = vmatpush.msra.mxu3 %v443_v53  ;;  %v99_v60 = vpop.permute.xlu0 %98 }
  0x8f   :  { %v107_v54 = vpop.permute.xlu1 %106  ;;  %v127_v63 = vmul.f32 %v415_v31, %v99_v60 }
  0x90   :  { %v129_v56 = vmul.f32 %v415_v31, %v107_v54 }
  0x91   :  { %v135_v4 = vadd.f32 %v127_v63, %v86_v0 }
  0x92   :  { %v137_v59 = vadd.f32 %v129_v56, %v88_v55 }
  0x93   :  { %v143_v8 = vmax.f32 %v135_v4, 0.0 }
  0x94   :  { %v145_v62 = vmax.f32 %v137_v59, 0.0 }
  0x95   :  { %v151_v16 = vmul.f32 %v143_v8, %v143_v8 }
  0x96   :  { %211 = vmatpush.msra.mxu0 %v145_v62  ;;  %319 = vmatpush.msra.mxu1 %v145_v62  ;;  %v153_v22 = vmul.f32 %v145_v62, %v145_v62 }
  0x97   :  { %320 = vmatpush.msra.mxu2 %v145_v62  ;;  %321 = vmatpush.msra.mxu3 %v145_v62  ;;  %v103_v1 = vpop.permute.xlu1 %102  ;;  %v272_v62 = vpop.permute.xlu2 %271 }
  0x98   :  { %v128_v3 = vmul.f32 %v415_v31, %v103_v1  ;;  %v277_v1 = vpop.permute.xlu0 %276 }
  0x9a   :  { %v136_v5 = vadd.f32 %v128_v3, %v87_v2 }
  0x9c   :  { %v144_v6 = vmax.f32 %v136_v5, 0.0 }
  0x9e   :  { %212 = vmatpush.msra.mxu0 %v144_v6  ;;  %322 = vmatpush.msra.mxu1 %v144_v6  ;;  %v152_v20 = vmul.f32 %v144_v6, %v144_v6 }
  0x9f   :  { %323 = vmatpush.msra.mxu2 %v144_v6  ;;  %324 = vmatpush.msra.mxu3 %v144_v6 }
  0xa0   :  { %v47_v10 = vpop.permute.xlu1 %46  ;;  %213 = vmatpush.msra.mxu0 %v143_v8  ;;  %325 = vmatpush.msra.mxu1 %v143_v8 }
  0xa1   :  { %v85_v11 = vmul.f32 %v413_v30, %v47_v10  ;;  %326 = vmatpush.msra.mxu2 %v143_v8  ;;  %327 = vmatpush.msra.mxu3 %v143_v8  ;;  %v157_v30 = vmul.f32 %v423_v44, %v423_v44 }
  0xa3   :  { %v134_v12 = vadd.f32 %v126_v9, %v85_v11 }
  0xa5   :  { %v142_v13 = vmax.f32 %v134_v12, 0.0 }
  0xa7   :  { %v150_v17 = vmul.f32 %v142_v13, %v142_v13  ;;  %214 = vmatpush.msra.mxu0 %v142_v13  ;;  %328 = vmatpush.msra.mxu1 %v142_v13 }
  0xa8   :  { %329 = vmatpush.msra.mxu2 %v142_v13  ;;  %330 = vmatpush.msra.mxu3 %v142_v13  ;;  %v267_v61 = vpop.permute.xlu1 %266 }
  0xa9   :  { %v158_v21 = vadd.f32 %v151_v16, %v150_v17  ;;  %303 = vmatmul.msk.f32.vlgmr.msra.gmra.mxu0 %vm186_vm3, %v182_v14  ;;  %304 = vmatmul.msk.f32.vlgmr.msra.gmra.mxu1 %vm186_vm3, %v183_v15 }
  0xaa   :  { %305 = vmatmul.msk.f32.vlgmr.msra.gmra.mxu2 %vm186_vm3, %v184_v18  ;;  %306 = vmatmul.msk.f32.vlgmr.msra.gmra.mxu3 %vm186_vm3, %v185_v19 }
  0xab   :  { %v159_v23 = vadd.f32 %v158_v21, %v152_v20 }
  0xad   :  { %v160_v25 = vadd.f32 %v159_v23, %v153_v22 }
  0xaf   :  { %v161_v27 = vadd.f32 %v160_v25, %v154_v24 }
  0xb0   :  { %v282_v12 = vpop.permute.xlu1 %281 }
  0xb1   :  { %v162_v29 = vadd.f32 %v161_v27, %v155_v26 }
  0xb3   :  { %v163_v31 = vadd.f32 %v162_v29, %v156_v28 }
  0xb5   :  { %v164_v32 = vadd.f32 %v163_v31, %v157_v30 }
  0xb7   :  { %v165_v33 = vrot.slane %v164_v32, 4 }
  0xb9   :  { %v166_v34 = vadd.f32 %v165_v33, %v164_v32 }
  0xbb   :  { %v167_v35 = vrot.slane %v166_v34, 2 }
  0xbd   :  { %v168_v36 = vadd.f32 %v167_v35, %v166_v34 }
  0xbf   :  { %v169_v37 = vrot.slane %v168_v36, 1 }
  0xc1   :  { %v170_v38 = vadd.f32 %v169_v37, %v168_v36 }
  0xc3   :  { %v171_v39 = vmax.f32 %v170_v38, 1e-24 }
  0xc5   :  { %349 = vrsqrt.f32 %v171_v39  ;;  %vm178_vm5 = vweird.f32 %v171_v39 }
  0xcb   :  { %v350_v40 = vpop.eup %349 }
  0xcc   :  { %v173_v41 = vmul.f32 %v350_v40, %v171_v39  ;;  %vm179_vm4 = vweird.f32 %v350_v40 }
  0xcd   :  { %vm180_vm6 = vmor %vm178_vm5, %vm179_vm4 }
  0xce   :  { %v174_v42 = vmul.f32 %v350_v40, %v173_v41 }
  0xd0   :  { %v175_v43 = vmul.f32 0.5, %v174_v42 }
  0xd2   :  { %v176_v46 = vsub.f32 1.5, %v175_v43 }
  0xd4   :  { %v177_v45 = vmul.f32 %v350_v40, %v176_v46 }
  0xd6   :  { %v181_v44 = vsel %vm180_vm6, %v350_v40, %v177_v45 }
 0x126   :  { %v216_v47 = vpop.f32.mrf.mxu0  ;;  %v219_v48 = vpop.f32.mrf.mxu1 }
 0x127   :  { %v228_v49 = vmul.f32 %v216_v47, %v181_v44  ;;  %v229_v50 = vmul.f32 %v219_v48, %v181_v44 }
 0x129   :  { %v232_v51 = vmax.f32 %v228_v49, 0.0  ;;  %v233_v52 = vmax.f32 %v229_v50, 0.0 }
 0x12b   :  { %v236_v55 = vmul.f32 %v232_v51, %v232_v51  ;;  %v237_v56 = vmul.f32 %v233_v52, %v233_v52  ;;  %v284_v2 = vmul.f32 %v267_v61, %v232_v51  ;;  %v285_v3 = vmul.f32 %v272_v62, %v233_v52 }
 0x12d   :  { %v222_v53 = vpop.f32.mrf.mxu2  ;;  %v225_v54 = vpop.f32.mrf.mxu3  ;;  %v240_v63 = vadd.f32 %v237_v56, %v236_v55  ;;  %v288_v8 = vadd.f32 %v285_v3, %v284_v2 }
 0x12e   :  { %v230_v57 = vmul.f32 %v222_v53, %v181_v44  ;;  %v231_v58 = vmul.f32 %v225_v54, %v181_v44 }
 0x130   :  { %v234_v59 = vmax.f32 %v230_v57, 0.0  ;;  %v235_v60 = vmax.f32 %v231_v58, 0.0 }
 0x132   :  { %v238_v0 = vmul.f32 %v234_v59, %v234_v59  ;;  %v239_v5 = vmul.f32 %v235_v60, %v235_v60  ;;  %v286_v7 = vmul.f32 %v277_v1, %v234_v59  ;;  %v287_v14 = vmul.f32 %v282_v12, %v235_v60 }
 0x134   :  { %v241_v4 = vadd.f32 %v240_v63, %v238_v0  ;;  %v289_v11 = vadd.f32 %v288_v8, %v286_v7 }
 0x136   :  { %v242_v6 = vadd.f32 %v241_v4, %v239_v5  ;;  %v290_v16 = vadd.f32 %v289_v11, %v287_v14 }
 0x138   :  { %v243_v9 = vrot.slane %v242_v6, 4  ;;  %v291_v19 = vrot.slane %v290_v16, 4 }
 0x13a   :  { %v244_v10 = vadd.f32 %v243_v9, %v242_v6  ;;  %v292_v21 = vadd.f32 %v291_v19, %v290_v16 }
 0x13c   :  { %v245_v13 = vrot.slane %v244_v10, 2  ;;  %v293_v22 = vrot.slane %v292_v21, 2 }
 0x13e   :  { %v246_v15 = vadd.f32 %v245_v13, %v244_v10  ;;  %v294_v25 = vadd.f32 %v293_v22, %v292_v21 }
 0x140   :  { %v247_v17 = vrot.slane %v246_v15, 1  ;;  %v295_v28 = vrot.slane %v294_v25, 1 }
 0x142   :  { %v248_v18 = vadd.f32 %v247_v17, %v246_v15  ;;  %v296_v31 = vadd.f32 %v295_v28, %v294_v25 }
 0x144   :  { %v249_v20 = vmax.f32 %v248_v18, 1e-24 }
 0x146   :  { %351 = vrsqrt.f32 %v249_v20  ;;  %vm256_vm8 = vweird.f32 %v249_v20 }
 0x14c   :  { %v352_v23 = vpop.eup %351 }
 0x14d   :  { %v251_v24 = vmul.f32 %v352_v23, %v249_v20  ;;  %vm257_vm7 = vweird.f32 %v352_v23 }
 0x14e   :  { %vm258_vm9 = vmor %vm256_vm8, %vm257_vm7 }
 0x14f   :  { %v252_v26 = vmul.f32 %v352_v23, %v251_v24 }
 0x151   :  { %v253_v27 = vmul.f32 0.5, %v252_v26 }
 0x153   :  { %v254_v29 = vsub.f32 1.5, %v253_v27 }
 0x155   :  { %v255_v30 = vmul.f32 %v352_v23, %v254_v29 }
 0x157   :  { %v259_v32 = vsel %vm258_vm9, %v352_v23, %v255_v30 }
 0x158   :  { %v297_v33 = vmul.f32 %v296_v31, %v259_v32 }
 0x15a   :  { %298 = vst [vmem:[%s490_s4] sm:$0x1] %v297_v33 }

</bundles_post_ra>
